<compile_context>
chip_gen: v5e
topology: v5e:2x2
jax: 0.10.0
libtpu: 0.0.40
codegen_flags: <defaults>
</compile_context>

<pallas_src>
import functools

import jax
import jax.numpy as jnp
from jax.experimental import pallas as pl
from jax.experimental.pallas import tpu as pltpu


# ---------------------------------------------------------------------------
# Kernel
# ---------------------------------------------------------------------------
def _rope_kernel(cos_ref, sin_ref, perm_ref, q_ref, k_ref, qo_ref, ko_ref,
                 *, exact_f32: bool):
    # cos_ref / sin_ref : (ROWS_TILE, half) f32 tables (resident)
    # perm_ref          : (D, D) f32 0/1 de-interleave permutation (resident)
    # q_ref / k_ref     : (ROWS_TILE, D) input rows
    # qo_ref / ko_ref   : (ROWS_TILE, D) rotated outputs
    half = cos_ref.shape[-1]
    cos = cos_ref[...]
    sin = sin_ref[...]
    perm = perm_ref[...]

    def deinterleave(x):
        # y[:, :half] = x[:, 0::2], y[:, half:] = x[:, 1::2], via the MXU.
        if exact_f32:
            # Split x into bf16-exact pieces so the 0/1 permutation matmul is
            # lossless no matter how the MXU treats f32 inputs.
            a = x.astype(jnp.bfloat16).astype(jnp.float32)
            r = x - a
            b = r.astype(jnp.bfloat16).astype(jnp.float32)
            c = r - b
            parts = (a, b, c)
        else:
            parts = (x,)
        y = jnp.dot(parts[0], perm, preferred_element_type=jnp.float32)
        for p in parts[1:]:
            y = y + jnp.dot(p, perm, preferred_element_type=jnp.float32)
        return y

    def rotate(x_ref, o_ref):
        x = x_ref[...].astype(jnp.float32)
        y = deinterleave(x)
        x1 = y[:, :half]          # even lanes of x
        x2 = y[:, half:]          # odd lanes of x
        # Direct half-slice stores (no concat temporary).
        o_ref[:, :half] = (x1 * cos - x2 * sin).astype(o_ref.dtype)
        o_ref[:, half:] = (x1 * sin + x2 * cos).astype(o_ref.dtype)

    rotate(q_ref, qo_ref)
    rotate(k_ref, ko_ref)


# ---------------------------------------------------------------------------
# Tile selection
# ---------------------------------------------------------------------------
def _choose_rows_tile(total_rows, seq_len, dim, itemsize,
                      budget_bytes=12 * 1024 * 1024):
    """Row-block size over the flattened (B*H*S, D) view.

    The block must divide total_rows, keep the double-buffered VMEM footprint
    under `budget_bytes`, and keep the second-minor block dim sublane-aligned.
    """
    # double-buffered q,k inputs + q,k outputs + one cos/sin row (f32)
    bytes_per_row = 2 * 4 * dim * itemsize + 2 * (dim // 2) * 4
    max_rows = max(1, budget_bytes // bytes_per_row)
    min_rows = max(8, 8 * (4 // max(1, itemsize)))   # f32: 8, bf16: 16, int8: 32

    # Prefer at least 2 grid steps (pipelining / megacore) when possible.
    if total_rows // 2 >= min_rows:
        max_rows = min(max_rows, total_rows // 2)

    n_heads = total_rows // seq_len

    def legal(rows):
        return rows == total_rows or rows % min_rows == 0

    # Whole multiples of the sequence (m heads per block), largest that fits.
    for m in range(n_heads, 0, -1):
        rows = m * seq_len
        if n_heads % m == 0 and rows <= max_rows and legal(rows):
            return rows
    # Otherwise tile inside a sequence: largest divisor of seq_len that fits.
    for rows in range(min(seq_len, max_rows), 0, -1):
        if seq_len % rows == 0 and legal(rows):
            return rows
    # Fallback (rare shapes): one full sequence (or everything) per step.
    return seq_len if legal(seq_len) else total_rows


# ---------------------------------------------------------------------------
# Module-equivalent wrapper
# ---------------------------------------------------------------------------
class RotaryPositionalEmbedding:
    def __init__(self, dim: int, max_seq_len: int = 4096, base: int = 10000):
        self.dim = dim
        self.max_seq_len = max_seq_len
        self.base = base
        self.inv_freq = 1.0 / (
            base ** (jnp.arange(0, dim, 2, dtype=jnp.float32) / dim))
        self._build_cache(max_seq_len)

    def _build_cache(self, max_seq_len: int):
        t = jnp.arange(max_seq_len, dtype=jnp.float32)
        self.cache = t[:, None] * self.inv_freq[None, :]     # (L, dim//2)
        # cos/sin precomputed once (no per-grid-step EUP work in the kernel).
        self.cos_cache = jnp.cos(self.cache)
        self.sin_cache = jnp.sin(self.cache)

    def update_max_len(self, max_seq_len: int):
        self.max_seq_len = max_seq_len
        self._build_cache(max_seq_len)

    def _prepare_freqs(self, seq_len: int, start_pos: int = 0):
        # Mirrors the PyTorch module's stateful cache growth.  Note: this is a
        # Python-level (trace-time) update; seq_len is a static shape here.
        if seq_len > self.max_seq_len:
            self.update_max_len(seq_len)
        return (self.cos_cache[start_pos:seq_len, :],
                self.sin_cache[start_pos:seq_len, :])

    def __call__(self, q: jax.Array, k: jax.Array):
        return self.forward(q, k)

    def forward(self, q: jax.Array, k: jax.Array):
        # q, k: (B, H, S, D)
        B, H, S, D = q.shape
        assert k.shape == q.shape and D == self.dim and D % 2 == 0
        half = D // 2
        cos_s, sin_s = self._prepare_freqs(S)                # (S, half) each

        total_rows = B * H * S
        itemsize = jnp.dtype(q.dtype).itemsize
        rows_tile = _choose_rows_tile(total_rows, S, D, itemsize)
        grid = (total_rows // rows_tile,)

        # cos/sin block for a group of rows_tile rows of the flattened
        # (B*H*S) axis; flattened row r has sequence position r % S.
        if rows_tile >= S:
            # rows_tile = m * S -> pre-tile to exactly one resident block.
            reps = rows_tile // S
            cos_tab = jnp.tile(cos_s, (reps, 1))
            sin_tab = jnp.tile(sin_s, (reps, 1))
            freq_map = lambda i: (0, 0)
        else:
            # rows_tile divides S -> index the (S, half) table modularly.
            n_blocks = S // rows_tile
            cos_tab, sin_tab = cos_s, sin_s
            freq_map = lambda i: (i % n_blocks, 0)

        # 0/1 permutation mapping interleaved lanes to [evens | odds].
        row = jnp.arange(D, dtype=jnp.int32)[:, None]
        col = jnp.arange(D, dtype=jnp.int32)[None, :]
        perm = (((col < half) & (row == 2 * col)) |
                ((col >= half) & (row == 2 * (col - half) + 1))
                ).astype(jnp.float32)

        # Free metadata reshapes; no HBM data movement.
        qf = q.reshape(total_rows, D)
        kf = k.reshape(total_rows, D)

        row_spec = pl.BlockSpec((rows_tile, D), lambda i: (i, 0))
        freq_spec = pl.BlockSpec((rows_tile, half), freq_map)
        perm_spec = pl.BlockSpec((D, D), lambda i: (0, 0))

        kernel = functools.partial(
            _rope_kernel, exact_f32=(jnp.dtype(q.dtype) == jnp.float32))

        qo, ko = pl.pallas_call(
            kernel,
            out_shape=(jax.ShapeDtypeStruct((total_rows, D), q.dtype),
                       jax.ShapeDtypeStruct((total_rows, D), k.dtype)),
            grid_spec=pltpu.PrefetchScalarGridSpec(
                num_scalar_prefetch=0,
                grid=grid,
                in_specs=[freq_spec, freq_spec, perm_spec, row_spec, row_spec],
                out_specs=(row_spec, row_spec)),
            compiler_params=pltpu.CompilerParams(
                dimension_semantics=("parallel",),
                vmem_limit_bytes=32 * 1024 * 1024),
        )(cos_tab, sin_tab, perm, qf, kf)

        return qo.reshape(B, H, S, D), ko.reshape(B, H, S, D)


# ---------------------------------------------------------------------------
# Pure-JAX reference (mirrors the PyTorch forward exactly)
# ---------------------------------------------------------------------------
def _rope_ref(q, k, dim, base, max_seq_len):
    inv_freq = 1.0 / (base ** (jnp.arange(0, dim, 2, dtype=jnp.float32) / dim))
    t = jnp.arange(max_seq_len, dtype=jnp.float32)
    cache = t[:, None] * inv_freq[None, :]
    S = q.shape[-2]
    freqs = cache[None, None, :S, :]

    def rotate(x):
        x1 = x[..., 0::2]
        x2 = x[..., 1::2]
        r1 = x1 * jnp.cos(freqs) - x2 * jnp.sin(freqs)
        r2 = x1 * jnp.sin(freqs) + x2 * jnp.cos(freqs)
        return jnp.concatenate([r1, r2], axis=-1)

    return rotate(q), rotate(k)


if __name__ == "__main__":
    B, H, S, D = 2, 4, 8, 32
    key = jax.random.PRNGKey(0)
    kq, kk = jax.random.split(key)
    q = jax.random.normal(kq, (B, H, S, D), dtype=jnp.float32)
    k = jax.random.normal(kk, (B, H, S, D), dtype=jnp.float32)

    rope = RotaryPositionalEmbedding(dim=D, max_seq_len=64, base=10000)
    q_out, k_out = rope(q, k)
    jax.block_until_ready((q_out, k_out))

    q_ref, k_ref = _rope_ref(q, k, dim=D, base=10000, max_seq_len=64)
    assert jnp.allclose(q_out, q_ref, atol=1e-5, rtol=1e-5), "q mismatch"
    assert jnp.allclose(k_out, k_ref, atol=1e-5, rtol=1e-5), "k mismatch"

    print("KERNEL_OK")
</pallas_src>

<mosaic_0001>
module attributes {stable_mosaic.version = 11 : i64} {
  func.func @_rope_kernel(%arg0: i32, %arg1: memref<32x16xf32, #tpu.memory_space<vmem>>, %arg2: memref<32x16xf32, #tpu.memory_space<vmem>>, %arg3: memref<32x32xf32, #tpu.memory_space<vmem>>, %arg4: memref<32x32xf32, #tpu.memory_space<vmem>>, %arg5: memref<32x32xf32, #tpu.memory_space<vmem>>, %arg6: memref<32x32xf32, #tpu.memory_space<vmem>>, %arg7: memref<32x32xf32, #tpu.memory_space<vmem>>) attributes {dimension_semantics = [#tpu.dimension_semantics<parallel>], iteration_bounds = array<i64: 2>, scalar_prefetch = 0 : i64, scratch_operands = 0 : i64, tpu.core_type = #tpu.core_type<tc>, window_params = [{pipeline_mode = #tpu.pipeline_mode<synchronous>, transform_indices = @transform_0, window_bounds = array<i64: 32, 16>}, {pipeline_mode = #tpu.pipeline_mode<synchronous>, transform_indices = @transform_1, window_bounds = array<i64: 32, 16>}, {pipeline_mode = #tpu.pipeline_mode<synchronous>, transform_indices = @transform_2, window_bounds = array<i64: 32, 32>}, {transform_indices = @transform_3, window_bounds = array<i64: 32, 32>}, {transform_indices = @transform_4, window_bounds = array<i64: 32, 32>}, {transform_indices = @transform_5, window_bounds = array<i64: 32, 32>}, {transform_indices = @transform_6, window_bounds = array<i64: 32, 32>}]} {
    %c0 = arith.constant 0 : index
    %c0_0 = arith.constant 0 : index
    %0 = vector.load %arg1[%c0, %c0_0] : memref<32x16xf32, #tpu.memory_space<vmem>>, vector<32x16xf32>
    %c0_1 = arith.constant 0 : index
    %c0_2 = arith.constant 0 : index
    %1 = vector.load %arg2[%c0_1, %c0_2] : memref<32x16xf32, #tpu.memory_space<vmem>>, vector<32x16xf32>
    %c0_3 = arith.constant 0 : index
    %c0_4 = arith.constant 0 : index
    %2 = vector.load %arg3[%c0_3, %c0_4] : memref<32x32xf32, #tpu.memory_space<vmem>>, vector<32x32xf32>
    %c0_5 = arith.constant 0 : index
    %c0_6 = arith.constant 0 : index
    %3 = vector.load %arg4[%c0_5, %c0_6] : memref<32x32xf32, #tpu.memory_space<vmem>>, vector<32x32xf32>
    %4 = arith.truncf %3 : vector<32x32xf32> to vector<32x32xbf16>
    %5 = arith.extf %4 : vector<32x32xbf16> to vector<32x32xf32>
    %6 = arith.subf %3, %5 : vector<32x32xf32>
    %7 = arith.truncf %6 : vector<32x32xf32> to vector<32x32xbf16>
    %8 = arith.extf %7 : vector<32x32xbf16> to vector<32x32xf32>
    %9 = arith.subf %6, %8 : vector<32x32xf32>
    %cst = arith.constant dense<0.000000e+00> : vector<32x32xf32>
    %10 = tpu.matmul %5, %2, %cst {dimension_numbers = #tpu.dot_dimension_numbers<[1], [0], [0], [1], [0, 0, 1, 1], [], []>} : vector<32x32xf32>, vector<32x32xf32>, vector<32x32xf32> -> vector<32x32xf32>
    %cst_7 = arith.constant dense<0.000000e+00> : vector<32x32xf32>
    %11 = tpu.matmul %8, %2, %cst_7 {dimension_numbers = #tpu.dot_dimension_numbers<[1], [0], [0], [1], [0, 0, 1, 1], [], []>} : vector<32x32xf32>, vector<32x32xf32>, vector<32x32xf32> -> vector<32x32xf32>
    %12 = arith.addf %10, %11 : vector<32x32xf32>
    %cst_8 = arith.constant dense<0.000000e+00> : vector<32x32xf32>
    %13 = tpu.matmul %9, %2, %cst_8 {dimension_numbers = #tpu.dot_dimension_numbers<[1], [0], [0], [1], [0, 0, 1, 1], [], []>} : vector<32x32xf32>, vector<32x32xf32>, vector<32x32xf32> -> vector<32x32xf32>
    %14 = arith.addf %12, %13 : vector<32x32xf32>
    %15 = vector.extract_strided_slice %14 {offsets = [0, 0], sizes = [32, 16], strides = [1, 1]} : vector<32x32xf32> to vector<32x16xf32>
    %16 = vector.extract_strided_slice %14 {offsets = [0, 16], sizes = [32, 16], strides = [1, 1]} : vector<32x32xf32> to vector<32x16xf32>
    %17 = arith.mulf %15, %0 : vector<32x16xf32>
    %18 = arith.mulf %16, %1 : vector<32x16xf32>
    %19 = arith.subf %17, %18 : vector<32x16xf32>
    %c0_9 = arith.constant 0 : index
    %c0_10 = arith.constant 0 : index
    %20 = vector.load %arg6[%c0_9, %c0_10] : memref<32x32xf32, #tpu.memory_space<vmem>>, vector<32x16xf32>
    tpu.vector_store %arg6[%c0_9, %c0_10], %19 {strides = array<i32>} : memref<32x32xf32, #tpu.memory_space<vmem>>, vector<32x16xf32>,
    %21 = arith.mulf %15, %1 : vector<32x16xf32>
    %22 = arith.mulf %16, %0 : vector<32x16xf32>
    %23 = arith.addf %21, %22 : vector<32x16xf32>
    %c0_11 = arith.constant 0 : index
    %c16 = arith.constant 16 : index
    %24 = vector.load %arg6[%c0_11, %c16] : memref<32x32xf32, #tpu.memory_space<vmem>>, vector<32x16xf32>
    tpu.vector_store %arg6[%c0_11, %c16], %23 {strides = array<i32>} : memref<32x32xf32, #tpu.memory_space<vmem>>, vector<32x16xf32>,
    %c0_12 = arith.constant 0 : index
    %c0_13 = arith.constant 0 : index
    %25 = vector.load %arg5[%c0_12, %c0_13] : memref<32x32xf32, #tpu.memory_space<vmem>>, vector<32x32xf32>
    %26 = arith.truncf %25 : vector<32x32xf32> to vector<32x32xbf16>
    %27 = arith.extf %26 : vector<32x32xbf16> to vector<32x32xf32>
    %28 = arith.subf %25, %27 : vector<32x32xf32>
    %29 = arith.truncf %28 : vector<32x32xf32> to vector<32x32xbf16>
    %30 = arith.extf %29 : vector<32x32xbf16> to vector<32x32xf32>
    %31 = arith.subf %28, %30 : vector<32x32xf32>
    %cst_14 = arith.constant dense<0.000000e+00> : vector<32x32xf32>
    %32 = tpu.matmul %27, %2, %cst_14 {dimension_numbers = #tpu.dot_dimension_numbers<[1], [0], [0], [1], [0, 0, 1, 1], [], []>} : vector<32x32xf32>, vector<32x32xf32>, vector<32x32xf32> -> vector<32x32xf32>
    %cst_15 = arith.constant dense<0.000000e+00> : vector<32x32xf32>
    %33 = tpu.matmul %30, %2, %cst_15 {dimension_numbers = #tpu.dot_dimension_numbers<[1], [0], [0], [1], [0, 0, 1, 1], [], []>} : vector<32x32xf32>, vector<32x32xf32>, vector<32x32xf32> -> vector<32x32xf32>
    %34 = arith.addf %32, %33 : vector<32x32xf32>
    %cst_16 = arith.constant dense<0.000000e+00> : vector<32x32xf32>
    %35 = tpu.matmul %31, %2, %cst_16 {dimension_numbers = #tpu.dot_dimension_numbers<[1], [0], [0], [1], [0, 0, 1, 1], [], []>} : vector<32x32xf32>, vector<32x32xf32>, vector<32x32xf32> -> vector<32x32xf32>
    %36 = arith.addf %34, %35 : vector<32x32xf32>
    %37 = vector.extract_strided_slice %36 {offsets = [0, 0], sizes = [32, 16], strides = [1, 1]} : vector<32x32xf32> to vector<32x16xf32>
    %38 = vector.extract_strided_slice %36 {offsets = [0, 16], sizes = [32, 16], strides = [1, 1]} : vector<32x32xf32> to vector<32x16xf32>
    %39 = arith.mulf %37, %0 : vector<32x16xf32>
    %40 = arith.mulf %38, %1 : vector<32x16xf32>
    %41 = arith.subf %39, %40 : vector<32x16xf32>
    %c0_17 = arith.constant 0 : index
    %c0_18 = arith.constant 0 : index
    %42 = vector.load %arg7[%c0_17, %c0_18] : memref<32x32xf32, #tpu.memory_space<vmem>>, vector<32x16xf32>
    tpu.vector_store %arg7[%c0_17, %c0_18], %41 {strides = array<i32>} : memref<32x32xf32, #tpu.memory_space<vmem>>, vector<32x16xf32>,
    %43 = arith.mulf %37, %1 : vector<32x16xf32>
    %44 = arith.mulf %38, %0 : vector<32x16xf32>
    %45 = arith.addf %43, %44 : vector<32x16xf32>
    %c0_19 = arith.constant 0 : index
    %c16_20 = arith.constant 16 : index
    %46 = vector.load %arg7[%c0_19, %c16_20] : memref<32x32xf32, #tpu.memory_space<vmem>>, vector<32x16xf32>
    tpu.vector_store %arg7[%c0_19, %c16_20], %45 {strides = array<i32>} : memref<32x32xf32, #tpu.memory_space<vmem>>, vector<32x16xf32>,
    return
  }
  func.func @transform_0(%arg0: i32) -> (i32, i32) {
    %c0_i32 = arith.constant 0 : i32
    %c0_i32_0 = arith.constant 0 : i32
    %c0_i32_1 = arith.constant 0 : i32
    return %c0_i32, %c0_i32_0 : i32, i32
  }
  func.func @transform_1(%arg0: i32) -> (i32, i32) {
    %c0_i32 = arith.constant 0 : i32
    %c0_i32_0 = arith.constant 0 : i32
    %c0_i32_1 = arith.constant 0 : i32
    return %c0_i32, %c0_i32_0 : i32, i32
  }
  func.func @transform_2(%arg0: i32) -> (i32, i32) {
    %c0_i32 = arith.constant 0 : i32
    %c0_i32_0 = arith.constant 0 : i32
    %c0_i32_1 = arith.constant 0 : i32
    return %c0_i32, %c0_i32_0 : i32, i32
  }
  func.func @transform_3(%arg0: i32) -> (i32, i32) {
    %c0_i32 = arith.constant 0 : i32
    %c0_i32_0 = arith.constant 0 : i32
    return %arg0, %c0_i32 : i32, i32
  }
  func.func @transform_4(%arg0: i32) -> (i32, i32) {
    %c0_i32 = arith.constant 0 : i32
    %c0_i32_0 = arith.constant 0 : i32
    return %arg0, %c0_i32 : i32, i32
  }
  func.func @transform_5(%arg0: i32) -> (i32, i32) {
    %c0_i32 = arith.constant 0 : i32
    %c0_i32_0 = arith.constant 0 : i32
    return %arg0, %c0_i32 : i32, i32
  }
  func.func @transform_6(%arg0: i32) -> (i32, i32) {
    %c0_i32 = arith.constant 0 : i32
    %c0_i32_0 = arith.constant 0 : i32
    return %arg0, %c0_i32 : i32, i32
  }
}

</mosaic_0001>

<bundles_post_ra>
// kernel: tpu_custom_call.1
= control target key start
LH: loop header
LB: loop body
LE: loop exit
PB: predicated region body
PF: predicated region fallthrough
CT: control target
= control target key end

     0   :  { %s1012_s21 = smov 0   ;;  %s1292_s0 = inlined_call_operand.vmem [shape: f32[32,16], index: 0, kind: input, shape index: {}]   ;;  %s1293_s1 = inlined_call_operand.vmem [shape: f32[32,16], index: 1, kind: input, shape index: {}]   ;;  %s1294_s2 = inlined_call_operand.vmem [shape: f32[32,32], index: 2, kind: input, shape index: {}]   ;;  %s1295_s3 = inlined_call_operand.vmem [shape: f32[64,32], index: 3, kind: input, shape index: {}]   ;;  %s1296_s4 = inlined_call_operand.vmem [shape: f32[64,32], index: 4, kind: input, shape index: {}]   ;;  %s1297_s5 = inlined_call_operand.vmem [shape: f32[64,32], index: 5, kind: output, shape index: {0}]   ;;  %s1298_s6 = inlined_call_operand.vmem [shape: f32[64,32], index: 6, kind: output, shape index: {1}]  }
   0x1 LB: > { %s910_s22 = sadd.s32 4294967295, %s973_s21   ;;  %p914_p0 = scmp.ge.s32.totalorder %s973_s21, 1  ;;  %s973_s21 = sphi %s1012_s21, %s17_s21  }
   0x2   : > { %p227_p1 = scmp.lt.s32.totalorder %s973_s21, 3 }
   0x4   : > { %p228_p2 = pnand %p914_p0, %p227_p1 }
   0x5   : > { %s915_s27 = sshll.u32 (!%p228_p2), %s910_s22, 2  ;;  %s975_s17 = smov (!%p228_p2), 16  }
   0x6   : > { %231 = sbr.rel (%p228_p2) target bundleno = 438 (0x1b6), region = 40  ;;  %p268_p3 = scmp.lt.s32.totalorder (!%p228_p2), %s915_s27, 7 }
   0x7   : > { %s976_s10 = smov (!%p228_p2), 112  }
   0xb   : > { %v302_v0 = vld [vmem:[%s1294_s2 + $0x18] sm:$0xff]  ;;  %v301_v1 = vld [vmem:[%s1294_s2 + $0x10] sm:$0xff]  ;;  %v300_v2 = vld [vmem:[%s1294_s2 + $0x8] sm:$0xff]  ;;  %s1300_s27 = smov (!%p268_p3, %s915_s27), 7  ;;  %vm331_vm0 = vcmask 261120   ;;  %vm503_vm1 = vcmask 130048  }
   0xc   : > { %953 = vmatpush.msra.mxu3 %v302_v0  ;;  %356 = vmatpush.msra.mxu0 %v302_v0  ;;  %v1032_v3 = vld [vmem:[%s1294_s2] sm:$0xff]  ;;  %s1034_s8 = sshll.u32 %s1300_s27, 3  ;;  %v1090_v44 = vld [vmem:[%s1292_s0 + $0x10] sm:$0xff]  ;;  %v1095_v45 = vld [vmem:[%s1292_s0 + $0x8] sm:$0xff]  ;;  %vm568_vm2 = vcmask 261248  }
   0xd   : > { %949 = vmatpush.msra.mxu2 %v302_v0  ;;  %397 = vmatpush.msra.mxu1 %v302_v0  ;;  %s271_s11 = scalar_lea.vmem %s1295_s3, %s1034_s8  ;;  %s1046_s14 = scalar_lea.vmem %s1296_s4, %s1034_s8  ;;  %v1065_v28 = vld [vmem:[%s1292_s0] sm:$0xff]  ;;  %v1114_v53 = vld [vmem:[%s1292_s0 + $0x18] sm:$0xff]  ;;  %v1119_v54 = vld [vmem:[%s1293_s1 + $0x10] sm:$0xff] }
   0xe   : > { %954 = vmatpush.msra.mxu3 %v301_v1  ;;  %357 = vmatpush.msra.mxu0 %v301_v1  ;;  %v305_v4 = vld [vmem:[%s271_s11 + $0x10] sm:$0xff]  ;;  %v303_v5 = vld [vmem:[%s271_s11] sm:$0xff]  ;;  %v306_v6 = vld [vmem:[%s271_s11 + $0x18] sm:$0xff]  ;;  %s1225_s13 = scalar_lea.vmem %s1298_s6, %s1034_s8  ;;  %s1244_s16 = scalar_lea.vmem %s1297_s5, %s1034_s8 }
   0xf   : > { %950 = vmatpush.msra.mxu2 %v301_v1  ;;  %398 = vmatpush.msra.mxu1 %v301_v1  ;;  %v309_v7 = vpack.c.bf16 %v305_v4, %v305_v4  ;;  %v307_v8 = vpack.c.bf16 %v303_v5, %v303_v5  ;;  %v310_v9 = vpack.c.bf16 %v306_v6, %v306_v6  ;;  %v304_v10 = vld [vmem:[%s271_s11 + $0x8] sm:$0xff]  ;;  %v573_v11 = vld [vmem:[%s1046_s14] sm:$0xff]  ;;  %v575_v35 = vld [vmem:[%s1046_s14 + $0x10] sm:$0xff] }
  0x10   : > { %955 = vmatpush.msra.mxu3 %v300_v2  ;;  %358 = vmatpush.msra.mxu0 %v300_v2  ;;  %v308_v12 = vpack.c.bf16 %v304_v10, %v304_v10  ;;  %v577_v13 = vpack.c.bf16 %v573_v11, %v573_v11  ;;  %v574_v17 = vld [vmem:[%s1046_s14 + $0x8] sm:$0xff]  ;;  %v579_v36 = vpack.c.bf16 %v575_v35, %v575_v35  ;;  %v576_v46 = vld [vmem:[%s1046_s14 + $0x18] sm:$0xff]  ;;  %v1105_v47 = vld [vmem:[%s1293_s1] sm:$0xff] }
  0x11   : > { %951 = vmatpush.msra.mxu2 %v300_v2  ;;  %399 = vmatpush.msra.mxu1 %v300_v2  ;;  %v313_v14 = vunpack.c.l.bf16 %v309_v7  ;;  %v311_v15 = vunpack.c.l.bf16 %v307_v8  ;;  %v314_v16 = vunpack.c.l.bf16 %v310_v9  ;;  %v578_v24 = vpack.c.bf16 %v574_v17, %v574_v17  ;;  %v1126_v57 = vld [vmem:[%s1293_s1 + $0x8] sm:$0xff]  ;;  %v1140_v62 = vld [vmem:[%s1293_s1 + $0x18] sm:$0xff] }
  0x12   : > { %956 = vmatpush.msra.mxu3 %v1032_v3  ;;  %359 = vmatpush.msra.mxu0 %v1032_v3  ;;  %v312_v18 = vunpack.c.l.bf16 %v308_v12  ;;  %v581_v19 = vunpack.c.l.bf16 %v577_v13  ;;  %v583_v43 = vunpack.c.l.bf16 %v579_v36  ;;  %v580_v51 = vpack.c.bf16 %v576_v46, %v576_v46 }
  0x13   : > { %952 = vmatpush.msra.mxu2 %v1032_v3  ;;  %400 = vmatpush.msra.mxu1 %v1032_v3  ;;  %v1052_v20 = vsub.f32 %v305_v4, %v313_v14  ;;  %v315_v21 = vsub.f32 %v303_v5, %v311_v15  ;;  %v1056_v22 = vsub.f32 %v306_v6, %v314_v16  ;;  %v582_v34 = vunpack.c.l.bf16 %v578_v24 }
  0x14   : > { %625 = vmatpush.msrb.mxu3 %v302_v0  ;;  %666 = vmatpush.msrb.mxu0 %v302_v0  ;;  %v1058_v23 = vsub.f32 %v304_v10, %v312_v18  ;;  %v585_v27 = vsub.f32 %v573_v11, %v581_v19  ;;  %v587_v50 = vsub.f32 %v575_v35, %v583_v43  ;;  %v584_v56 = vunpack.c.l.bf16 %v580_v51 }
  0x15   : > { %438 = vmatpush.msrb.mxu2 %v302_v0  ;;  %707 = vmatpush.msrb.mxu1 %v302_v0  ;;  %v319_v25 = vpack.c.bf16 %v315_v21, %v315_v21  ;;  %v321_v26 = vpack.c.bf16 %v1052_v20, %v1052_v20  ;;  %v322_v32 = vpack.c.bf16 %v1056_v22, %v1056_v22 }
  0x16   : > { %626 = vmatpush.msrb.mxu3 %v301_v1  ;;  %927 = vmatmul.msk.f32.vlgmr.msra.gmra.mxu1 %vm331_vm0, %v311_v15  ;;  %v320_v31 = vpack.c.bf16 %v1058_v23, %v1058_v23  ;;  %v589_v33 = vpack.c.bf16 %v585_v27, %v585_v27  ;;  %v586_v40 = vsub.f32 %v574_v17, %v582_v34 }
  0x17   : > { %439 = vmatpush.msrb.mxu2 %v301_v1  ;;  %929 = vmatmul.msk.f32.vlgmr.msra.gmra.mxu3 %vm331_vm0, %v313_v14  ;;  %v323_v29 = vunpack.c.l.bf16 %v319_v25  ;;  %v1069_v30 = vunpack.c.l.bf16 %v321_v26  ;;  %v326_v38 = vunpack.c.l.bf16 %v322_v32  ;;  %v591_v55 = vpack.c.bf16 %v587_v50, %v587_v50 }
  0x18   : > { %627 = vmatpush.msrb.mxu3 %v300_v2  ;;  %667 = vmatpush.msrb.mxu0 %v301_v1  ;;  %v324_v37 = vunpack.c.l.bf16 %v320_v31  ;;  %v593_v39 = vunpack.c.l.bf16 %v589_v33  ;;  %v590_v42 = vpack.c.bf16 %v586_v40, %v586_v40  ;;  %v588_v60 = vsub.f32 %v576_v46, %v584_v56 }
  0x19   : > { %440 = vmatpush.msrb.mxu2 %v300_v2  ;;  %708 = vmatpush.msrb.mxu1 %v301_v1  ;;  %v327_v48 = vsub.f32 %v315_v21, %v323_v29  ;;  %v595_v59 = vunpack.c.l.bf16 %v591_v55  ;;  %v329_v0 = vsub.f32 %v1052_v20, %v1069_v30 }
  0x1a   : > { %628 = vmatpush.msrb.mxu3 %v1032_v3  ;;  %668 = vmatpush.msrb.mxu0 %v300_v2  ;;  %v597_v41 = vsub.f32 %v585_v27, %v593_v39  ;;  %v594_v49 = vunpack.c.l.bf16 %v590_v42  ;;  %v328_v58 = vsub.f32 %v1058_v23, %v324_v37  ;;  %v592_v63 = vpack.c.bf16 %v588_v60, %v588_v60 }
  0x1b   : > { %441 = vmatpush.msrb.mxu2 %v1032_v3  ;;  %709 = vmatpush.msrb.mxu1 %v300_v2  ;;  %v599_v61 = vsub.f32 %v587_v50, %v595_v59 }
  0x1c   : > { %516 = vrot.lane.b32.xlu0 %v1065_v28, %s975_s17  ;;  %923 = vmatmul.msk.f32.vlgmr.msra.gmra.mxu0 %vm331_vm0, %v323_v29  ;;  %v598_v52 = vsub.f32 %v586_v40, %v594_v49  ;;  %v596_v1 = vunpack.c.l.bf16 %v592_v63 }
  0x1d   : > { %925 = vmatmul.msk.f32.vlgmr.msra.gmra.mxu2 %vm331_vm0, %v1069_v30  ;;  %669 = vmatpush.msrb.mxu0 %v1032_v3 }
  0x1e   : > { %710 = vmatpush.msrb.mxu1 %v1032_v3  ;;  %520 = vrot.lane.b32.xlu1 %v1090_v44, %s975_s17  ;;  %v600_v2 = vsub.f32 %v588_v60, %v596_v1  ;;  %v330_v3 = vsub.f32 %v1056_v22, %v326_v38 }
  0x1f   : > { %930 = vmatmul.msk.f32.gmra.mxu3 %vm331_vm0, %v314_v16  ;;  %928 = vmatmul.msk.f32.gmra.mxu1 %vm331_vm0, %v312_v18 }
  0x20   : > { %467 = vrot.lane.b32.xlu2 %v1105_v47, %s975_s17 }
  0x24   : > { %924 = vmatmul.msk.f32.gmra.mxu0 %vm331_vm0, %v324_v37  ;;  %518 = vrot.lane.b32.xlu0 %v1095_v45, %s975_s17 }
  0x25   : > { %926 = vmatmul.msk.f32.gmra.mxu2 %vm331_vm0, %v326_v38 }
  0x26   : > { %522 = vrot.lane.b32.xlu1 %v1114_v53, %s975_s17 }
  0x27   : > { %935 = vmatmul.msk.f32.vlgmr.msrb.gmra.mxu3 %vm331_vm0, %v593_v39  ;;  %943 = vmatmul.msk.f32.vlgmr.msrb.gmra.mxu1 %vm331_vm0, %v597_v41 }
  0x28   : > { %469 = vrot.lane.b32.xlu2 %v1126_v57, %s975_s17 }
  0x2c   : > { %939 = vmatmul.msk.f32.vlgmr.msrb.gmra.mxu0 %vm331_vm0, %v581_v19  ;;  %471 = vrot.lane.b32.xlu0 %v1119_v54, %s975_s17 }
  0x2d   : > { %931 = vmatmul.msk.f32.vlgmr.msrb.gmra.mxu2 %vm331_vm0, %v327_v48 }
  0x2e   : > { %473 = vrot.lane.b32.xlu1 %v1140_v62, %s975_s17 }
  0x2f   : > { %936 = vmatmul.msk.f32.gmra.mxu3 %vm331_vm0, %v594_v49  ;;  %944 = vmatmul.msk.f32.gmra.mxu1 %vm331_vm0, %v598_v52 }
  0x34   : > { %940 = vmatmul.msk.f32.gmra.mxu0 %vm331_vm0, %v582_v34 }
  0x35   : > { %932 = vmatmul.msk.f32.gmra.mxu2 %vm331_vm0, %v328_v58 }
  0x37   : > { %937 = vmatmul.msk.f32.gmra.mxu3 %vm331_vm0, %v595_v59  ;;  %945 = vmatmul.msk.f32.gmra.mxu1 %vm331_vm0, %v599_v61 }
  0x3c   : > { %941 = vmatmul.msk.f32.gmra.mxu0 %vm331_vm0, %v583_v43 }
  0x3d   : > { %933 = vmatmul.msk.f32.gmra.mxu2 %vm331_vm0, %v329_v0 }
  0x3f   : > { %938 = vmatmul.msk.f32.gmra.mxu3 %vm331_vm0, %v596_v1  ;;  %946 = vmatmul.msk.f32.gmra.mxu1 %vm331_vm0, %v600_v2 }
  0x44   : > { %942 = vmatmul.msk.f32.gmra.mxu0 %vm331_vm0, %v584_v56 }
  0x45   : > { %934 = vmatmul.msk.f32.gmra.mxu2 %vm331_vm0, %v330_v3 }
  0x7a   : > { %v468_v56 = vpop.permute.xlu2 %467 }
  0x82   : > { %v470_v2 = vpop.permute.xlu2 %469 }
  0x8e   : > { %v517_v16 = vpop.permute.xlu0 %516 }
  0x90   : > { %v521_v40 = vpop.permute.xlu1 %520 }
  0x93   : > { %v402_v4 = vpop.f32.mrf.mxu1 }
  0x96   : > { %v519_v29 = vpop.permute.xlu0 %518 }
  0x98   : > { %v523_v59 = vpop.permute.xlu1 %522 }
  0x99   : > { %v361_v5 = vpop.f32.mrf.mxu0 }
  0x9a   : > { %v408_v6 = vpop.f32.mrf.mxu3  ;;  %v403_v19 = vadd.f32 %v402_v4, %v361_v5 }
  0x9c   : > { %v405_v7 = vpop.f32.mrf.mxu1 }
  0xa0   : > { %v367_v8 = vpop.f32.mrf.mxu2 }
  0xa1   : > { %v364_v9 = vpop.f32.mrf.mxu0  ;;  %v409_v41 = vadd.f32 %v408_v6, %v367_v8  ;;  %v472_v6 = vpop.permute.xlu0 %471 }
  0xa2   : > { %v411_v10 = vpop.f32.mrf.mxu3  ;;  %v406_v30 = vadd.f32 %v405_v7, %v364_v9  ;;  %v474_v7 = vpop.permute.xlu1 %473 }
  0xa4   : > { %v712_v11 = vpop.f32.mrf.mxu1 }
  0xa8   : > { %v370_v12 = vpop.f32.mrf.mxu2 }
  0xa9   : > { %v671_v14 = vpop.f32.mrf.mxu0  ;;  %v412_v58 = vadd.f32 %v411_v10, %v370_v12 }
  0xaa   : > { %v630_v13 = vpop.f32.mrf.mxu3 }
  0xab   : > { %v672_v15 = vadd.f32 %v671_v14, %v630_v13 }
  0xac   : > { %v715_v18 = vpop.f32.mrf.mxu1 }
  0xad   : > { %v1157_v17 = vadd.f32 %v712_v11, %v672_v15 }
  0xaf   : > { %v764_v20 = vmul.f32 %v1157_v17, %v517_v16  ;;  %v732_v5 = vmul.f32 %v1157_v17, %v468_v56 }
  0xb0   : > { %v443_v21 = vpop.f32.mrf.mxu2 }
  0xb1   : > { %v1160_v22 = vadd.f32 %v443_v21, %v403_v19  ;;  %772 = vrot.lane.b32.xlu0 %v764_v20, %s976_s10  ;;  %v674_v24 = vpop.f32.mrf.mxu0  ;;  %v760_v19 = vmul.f32 %v1157_v17, %v1105_v47 }
  0xb2   : > { %v633_v23 = vpop.f32.mrf.mxu3 }
  0xb3   : > { %v528_v25 = vmul.f32 %v517_v16, %v1160_v22  ;;  %v675_v26 = vadd.f32 %v674_v24, %v633_v23  ;;  %v479_v0 = vmul.f32 %v468_v56, %v1160_v22  ;;  %v508_v12 = vmul.f32 %v1160_v22, %v1105_v47 }
  0xb4   : > { %v718_v31 = vpop.f32.mrf.mxu1 }
  0xb5   : > { %536 = vrot.lane.b32.xlu2 %v528_v25, %s976_s10  ;;  %v1165_v27 = vadd.f32 %v715_v18, %v675_v26 }
  0xb7   : > { %v765_v34 = vmul.f32 %v1165_v27, %v519_v29  ;;  %v733_v4 = vmul.f32 %v1165_v27, %v470_v2  ;;  %v761_v15 = vmul.f32 %v1165_v27, %v1126_v57 }
  0xb8   : > { %v446_v32 = vpop.f32.mrf.mxu2 }
  0xb9   : > { %v1167_v33 = vadd.f32 %v446_v32, %v406_v30  ;;  %v677_v36 = vpop.f32.mrf.mxu0  ;;  %v728_v30 = vmul.f32 %v1157_v17, %v1065_v28 }
  0xba   : > { %v636_v35 = vpop.f32.mrf.mxu3 }
  0xbb   : > { %v529_v37 = vmul.f32 %v519_v29, %v1167_v33  ;;  %v678_v38 = vadd.f32 %v677_v36, %v636_v35  ;;  %v480_v3 = vmul.f32 %v470_v2, %v1167_v33  ;;  %v509_v26 = vmul.f32 %v1167_v33, %v1126_v57 }
  0xbc   : > { %v721_v48 = vpop.f32.mrf.mxu1 }
  0xbd   : > { %774 = vrot.lane.b32.xlu2 %v765_v34, %s976_s10  ;;  %538 = vrot.lane.b32.xlu1 %v529_v37, %s976_s10  ;;  %v1173_v39 = vadd.f32 %v718_v31, %v678_v38  ;;  %v459_v38 = vmul.f32 %v1160_v22, %v1065_v28  ;;  %v460_v22 = vmul.f32 %v1167_v33, %v1095_v45 }
  0xbf   : > { %v766_v46 = vmul.f32 %v1173_v39, %v521_v40  ;;  %v734_v8 = vmul.f32 %v1173_v39, %v472_v6  ;;  %v762_v57 = vmul.f32 %v1173_v39, %v1119_v54 }
  0xc0   : > { %v449_v42 = vpop.f32.mrf.mxu2 }
  0xc1   : > { %v1175_v43 = vadd.f32 %v449_v42, %v409_v41  ;;  %v680_v50 = vpop.f32.mrf.mxu0 }
  0xc2   : > { %v639_v49 = vpop.f32.mrf.mxu3 }
  0xc3   : > { %v530_v51 = vmul.f32 %v521_v40, %v1175_v43  ;;  %v681_v52 = vadd.f32 %v680_v50, %v639_v49  ;;  %v481_v10 = vmul.f32 %v472_v6, %v1175_v43  ;;  %v510_v17 = vmul.f32 %v1175_v43, %v1119_v54 }
  0xc4   : > { %v461_v50 = vmul.f32 %v1175_v43, %v1090_v44 }
  0xc5   : > { %776 = vrot.lane.b32.xlu1 %v766_v46, %s976_s10  ;;  %540 = vrot.lane.b32.xlu0 %v530_v51, %s976_s10  ;;  %v1181_v55 = vadd.f32 %v721_v48, %v681_v52 }
  0xc7   : > { %v767_v63 = vmul.f32 %v1181_v55, %v523_v59  ;;  %v735_v11 = vmul.f32 %v1181_v55, %v474_v7  ;;  %v763_v40 = vmul.f32 %v1181_v55, %v1140_v62  ;;  %v731_v43 = vmul.f32 %v1181_v55, %v1114_v53 }
  0xc8   : > { %v452_v60 = vpop.f32.mrf.mxu2 }
  0xc9   : > { %v1183_v61 = vadd.f32 %v452_v60, %v412_v58 }
  0xcb   : > { %v531_v1 = vmul.f32 %v523_v59, %v1183_v61  ;;  %v482_v9 = vmul.f32 %v474_v7, %v1183_v61  ;;  %v511_v23 = vmul.f32 %v1183_v61, %v1140_v62  ;;  %v729_v62 = vmul.f32 %v1165_v27, %v1095_v45 }
  0xcc   : > { %v730_v45 = vmul.f32 %v1173_v39, %v1090_v44  ;;  %v462_v33 = vmul.f32 %v1183_v61, %v1114_v53 }
  0xcd   : > { %487 = vrot.lane.b32.xlu1 %v479_v0, %s976_s10  ;;  %778 = vrot.lane.b32.xlu0 %v767_v63, %s976_s10 }
  0xce   : > { %542 = vrot.lane.b32.xlu2 %v531_v1, %s976_s10 }
  0xd5   : > { %742 = vrot.lane.b32.xlu1 %v733_v4, %s976_s10  ;;  %489 = vrot.lane.b32.xlu0 %v480_v3, %s976_s10 }
  0xd6   : > { %740 = vrot.lane.b32.xlu2 %v732_v5, %s976_s10 }
  0xdd   : > { %744 = vrot.lane.b32.xlu0 %v734_v8, %s976_s10  ;;  %493 = vrot.lane.b32.xlu1 %v482_v9, %s976_s10 }
  0xde   : > { %491 = vrot.lane.b32.xlu2 %v481_v10, %s976_s10 }
  0xe6   : > { %746 = vrot.lane.b32.xlu2 %v735_v11, %s976_s10 }
 0x10f   : > { %v537_v13 = vpop.permute.xlu2 %536 }
 0x110   : > { %v548_v14 = vadd.f32 %v537_v13, %v508_v12 }
 0x112   : > { %556 = vrot.lane.b32.xlu0 %v548_v14, %s975_s17 }
 0x117   : > { %v775_v16 = vpop.permute.xlu2 %774 }
 0x118   : > { %v785_v18 = vadd.f32 %v775_v16, %v761_v15 }
 0x11a   : > { %794 = vrot.lane.b32.xlu0 %v785_v18, %s975_s17 }
 0x123   : > { %v773_v20 = vpop.permute.xlu0 %772 }
 0x124   : > { %v784_v21 = vadd.f32 %v773_v20, %v760_v19 }
 0x126   : > { %792 = vrot.lane.b32.xlu1 %v784_v21, %s975_s17 }
 0x128   : > { %v543_v24 = vpop.permute.xlu2 %542 }
 0x129   : > { %v551_v25 = vadd.f32 %v543_v24, %v511_v23 }
 0x12b   : > { %562 = vrot.lane.b32.xlu0 %v551_v25, %s975_s17 }
 0x12f   : > { %v539_v29 = vpop.permute.xlu1 %538 }
 0x130   : > { %v549_v47 = vadd.f32 %v539_v29, %v509_v26  ;;  %v741_v31 = vpop.permute.xlu2 %740 }
 0x131   : > { %v752_v32 = vsub.f32 %v728_v30, %v741_v31 }
 0x132   : > { %558 = vrot.lane.b32.xlu2 %v549_v47, %s975_s17 }
 0x133   : > { %756 = vst.msk [vmem:[%s1225_s13] sm:$0xff] %vm503_vm1, %v752_v32 }
 0x137   : > { %v777_v34 = vpop.permute.xlu1 %776  ;;  %v541_v35 = vpop.permute.xlu0 %540 }
 0x138   : > { %v786_v36 = vadd.f32 %v777_v34, %v762_v57  ;;  %v550_v37 = vadd.f32 %v541_v35, %v510_v17  ;;  %v492_v28 = vpop.permute.xlu2 %491 }
 0x139   : > { %v501_v56 = vsub.f32 %v461_v50, %v492_v28 }
 0x13a   : > { %796 = vrot.lane.b32.xlu2 %v786_v36, %s975_s17  ;;  %560 = vrot.lane.b32.xlu1 %v550_v37, %s975_s17 }
 0x13b   : > { %506 = vst.msk [vmem:[%s1244_s16 + $0x10] sm:$0xff] %vm503_vm1, %v501_v56 }
 0x13f   : > { %v488_v54 = vpop.permute.xlu1 %487  ;;  %v779_v41 = vpop.permute.xlu0 %778 }
 0x140   : > { %v499_v42 = vsub.f32 %v459_v38, %v488_v54  ;;  %v787_v46 = vadd.f32 %v779_v41, %v763_v40  ;;  %v747_v27 = vpop.permute.xlu2 %746 }
 0x141   : > { %v755_v0 = vsub.f32 %v731_v43, %v747_v27 }
 0x142   : > { %504 = vst.msk [vmem:[%s1244_s16] sm:$0xff] %vm503_vm1, %v499_v42  ;;  %798 = vrot.lane.b32.xlu1 %v787_v46, %s975_s17 }
 0x143   : > { %759 = vst.msk [vmem:[%s1225_s13 + $0x18] sm:$0xff] %vm503_vm1, %v755_v0 }
 0x147   : > { %v743_v48 = vpop.permute.xlu1 %742  ;;  %v490_v49 = vpop.permute.xlu0 %489 }
 0x148   : > { %v753_v51 = vsub.f32 %v729_v62, %v743_v48  ;;  %v500_v52 = vsub.f32 %v460_v22, %v490_v49 }
 0x14a   : > { %757 = vst.msk [vmem:[%s1225_s13 + $0x8] sm:$0xff] %vm503_vm1, %v753_v51 }
 0x14b   : > { %505 = vst.msk [vmem:[%s1244_s16 + $0x8] sm:$0xff] %vm503_vm1, %v500_v52 }
 0x14f   : > { %v745_v58 = vpop.permute.xlu0 %744  ;;  %v494_v59 = vpop.permute.xlu1 %493 }
 0x150   : > { %v754_v60 = vsub.f32 %v730_v45, %v745_v58  ;;  %v502_v63 = vsub.f32 %v462_v33, %v494_v59 }
 0x152   : > { %758 = vst.msk [vmem:[%s1225_s13 + $0x10] sm:$0xff] %vm503_vm1, %v754_v60 }
 0x153   : > { %507 = vst.msk [vmem:[%s1244_s16 + $0x18] sm:$0xff] %vm503_vm1, %v502_v63 }
 0x184   : > { %v557_v44 = vpop.permute.xlu0 %556 }
 0x185   : > { %569 = vst.msk [vmem:[%s1244_s16] sm:$0xff] %vm568_vm2, %v557_v44 }
 0x18c   : > { %v559_v53 = vpop.permute.xlu2 %558  ;;  %v795_v55 = vpop.permute.xlu0 %794 }
 0x18d   : > { %570 = vst.msk [vmem:[%s1244_s16 + $0x8] sm:$0xff] %vm568_vm2, %v559_v53 }
 0x18e   : > { %805 = vst.msk [vmem:[%s1225_s13 + $0x8] sm:$0xff] %vm568_vm2, %v795_v55 }
 0x194   : > { %v797_v61 = vpop.permute.xlu2 %796 }
 0x195   : > { %806 = vst.msk [vmem:[%s1225_s13 + $0x10] sm:$0xff] %vm568_vm2, %v797_v61 }
 0x198   : > { %v793_v39 = vpop.permute.xlu1 %792 }
 0x199   : > { %804 = vst.msk [vmem:[%s1225_s13] sm:$0xff] %vm568_vm2, %v793_v39 }
 0x19d   : > { %v563_v2 = vpop.permute.xlu0 %562 }
 0x19e   : > { %572 = vst.msk [vmem:[%s1244_s16 + $0x18] sm:$0xff] %vm568_vm2, %v563_v2 }
 0x1ac   : > { %v561_v1 = vpop.permute.xlu1 %560 }
 0x1ad   : > { %571 = vst.msk [vmem:[%s1244_s16 + $0x10] sm:$0xff] %vm568_vm2, %v561_v1 }
 0x1b4   : > { %v799_v3 = vpop.permute.xlu1 %798 }
 0x1b5   : > { %807 = vst.msk [vmem:[%s1225_s13 + $0x18] sm:$0xff] %vm568_vm2, %v799_v3 }
 0x1b6 PF: > { %s17_s21 = sadd.s32 1, %s973_s21  }
 0x1b7   : > { %p14_p4 = scmp.ge.s32.totalorder %s17_s21, 4  }
 0x1b9   :  { %16 = sbr.rel (!%p14_p4) target bundleno = 1 (0x1), region = 85 }

</bundles_post_ra>
